<compile_context>
chip_gen: v7x
topology: tpu7x:2x2x1
jax: 0.10.0
libtpu: 0.0.40
codegen_flags: <defaults>
</compile_context>

<pallas_src>
import functools

import jax
import jax.numpy as jnp
from jax import lax
from jax.experimental import pallas as pl
from jax.experimental.pallas import tpu as pltpu


def _mhsa_kernel(x_ref, wqkv_ref, bqkv_ref, wo_ref, bo_ref, o_ref, attn_sc, *,
                 num_heads, head_dim, exp_dtype):
    """Processes `block_b` batch rows per grid step, feature-major layout.

    x_ref    : (Bb, C, S) f32   input rows (channels on sublanes, seq on lanes)
    wqkv_ref : (3C, C)    bf16  fused QKV weight, PyTorch (out,in) layout,
                                softmax scale folded into the Q rows
    bqkv_ref : (3C, 1)    f32   fused QKV bias (Q part pre-scaled)
    wo_ref   : (C, C)     bf16  output projection weight, (out,in) layout
    bo_ref   : (C, 1)     f32   output projection bias
    o_ref    : (Bb, C, S) f32   output rows (feature-major)
    attn_sc  : (C, S)     f32   VMEM scratch: per-head outputs stacked on sublanes
    """
    block_b, C, S = x_ref.shape

    def one_row(b):
        x_t = x_ref[b].astype(jnp.bfloat16)                               # (C, S)
        # Fused QKV projection, transposed: one bf16 MXU pass, K = C.
        qkv_t = jnp.dot(wqkv_ref[...], x_t,
                        preferred_element_type=jnp.float32) + bqkv_ref[...]  # (3C, S) f32

        for h in range(num_heads):        # small static unroll over heads only
            lo = h * head_dim
            # 8-row sublane slices of the (8,128)-tiled f32 qkv_t: no lane relayout.
            qh = qkv_t[lo:lo + head_dim, :]                                # (hd, S)
            kh = qkv_t[C + lo:C + lo + head_dim, :]                        # (hd, S)
            vh = qkv_t[2 * C + lo:2 * C + lo + head_dim, :]                # (hd, S)

            # scores[i, j] = sum_d q[d, i] * k[d, j]   ("TN" dims, no transpose op)
            s = lax.dot_general(qh, kh, (((0,), (0,)), ((), ())),
                                preferred_element_type=jnp.float32)        # (S, S)
            s = s - jnp.max(s, axis=-1, keepdims=True)
            # exp in bf16 on v6e/v7x (bf16 EUP rate), f32 on v5e; denom stays f32.
            p = jnp.exp(s.astype(exp_dtype)).astype(jnp.float32)           # (S, S)
            l = jnp.sum(p, axis=-1, keepdims=True)                         # (S, 1)
            p = p * pl.reciprocal(l, approx=True)

            # attn_T[d, i] = sum_j v[d, j] * p[i, j]   ("NT" dims)
            attn_sc[lo:lo + head_dim, :] = lax.dot_general(
                vh, p, (((1,), (1,)), ((), ())),
                preferred_element_type=jnp.float32)                        # (hd, S)

        # Single output projection over all heads: K = C, heads stacked on sublanes.
        out_t = jnp.dot(wo_ref[...], attn_sc[...].astype(jnp.bfloat16),
                        preferred_element_type=jnp.float32) + bo_ref[...]  # (C, S)
        # TODO(synk): emit bf16 / a lane-dense output view if downstream tolerates
        # it; at C=32, S=64 the masked f32 store is not the bottleneck.
        o_ref[b] = out_t.astype(o_ref.dtype)

    if block_b == 1:
        one_row(0)
    else:
        def body(b, carry):
            one_row(b)
            return carry
        lax.fori_loop(0, block_b, body, 0)


def prepare_params(params, *, num_heads):
    """One-time fusion of the four Linear layers into kernel-ready arrays.

    Called once, outside the per-forward path (wrapper work was dominating at
    these problem sizes).
    """
    C = params["wq"].shape[0]
    head_dim = C // num_heads
    scale = 1.0 / (float(head_dim) ** 0.5)
    # Weights stay in PyTorch (out, in) layout: the kernel computes W @ x_T.
    wqkv = jnp.concatenate(
        [params["wq"] * scale, params["wk"], params["wv"]], axis=0
    ).astype(jnp.bfloat16)                                                 # (3C, C)
    bqkv = jnp.concatenate(
        [params["bq"] * scale, params["bk"], params["bv"]]
    ).reshape(3 * C, 1).astype(jnp.float32)                                # (3C, 1)
    wo = params["wo"].astype(jnp.bfloat16)                                 # (C, C)
    bo = params["bo"].reshape(C, 1).astype(jnp.float32)                    # (C, 1)
    return {"wqkv": wqkv, "bqkv": bqkv, "wo": wo, "bo": bo}


def _default_exp_dtype():
    # bf16 exponentials on v6e/v7x (bf16 EUP), f32 on v5e and older.
    try:
        kind = jax.devices()[0].device_kind.lower()
    except Exception:  # pragma: no cover
        return jnp.float32
    if any(v in kind for v in ("v2", "v3", "v4", "v5")):
        return jnp.float32
    return jnp.bfloat16


def _pick_block_b(B, C, S):
    """VMEM-budgeted batch block that still leaves several grid steps."""
    # Per-row estimate: double-buffered f32 in/out blocks + f32 (3C,S) qkv +
    # a few (S,S) f32 temporaries live at once.
    per_row = 4 * (C * S * 4) + 3 * C * S * 4 + 4 * S * S * 4
    budget = 8 * 1024 * 1024
    max_by_vmem = max(1, budget // max(per_row, 1))
    target_steps = min(B, 4)              # keep >= 4 grid steps when B allows
    max_by_steps = max(1, B // target_steps)
    block_b = max(1, min(max_by_vmem, max_by_steps))
    while B % block_b:
        block_b -= 1
    return block_b


def multi_head_self_attention(x, fused_params, *, num_heads, block_b=None,
                              exp_dtype=None):
    """x: (B, C, H, W) f32; fused_params from prepare_params(). Returns (B, C, H, W) f32."""
    B, C, H, W = x.shape
    S = H * W
    assert C % num_heads == 0
    head_dim = C // num_heads
    if exp_dtype is None:
        exp_dtype = _default_exp_dtype()
    if block_b is None:
        block_b = _pick_block_b(B, C, S)
    assert B % block_b == 0

    x_cs = x.reshape(B, C, S)             # NCHW -> (B, C, S): free, no transpose

    kernel = functools.partial(_mhsa_kernel, num_heads=num_heads,
                               head_dim=head_dim, exp_dtype=exp_dtype)

    out_cs = pl.pallas_call(
        kernel,
        out_shape=jax.ShapeDtypeStruct((B, C, S), jnp.float32),
        grid_spec=pltpu.PrefetchScalarGridSpec(
            num_scalar_prefetch=0,
            grid=(B // block_b,),
            in_specs=[
                pl.BlockSpec((block_b, C, S), lambda i: (i, 0, 0)),   # x
                pl.BlockSpec((3 * C, C), lambda i: (0, 0)),           # fused Wqkv
                pl.BlockSpec((3 * C, 1), lambda i: (0, 0)),           # fused bqkv
                pl.BlockSpec((C, C), lambda i: (0, 0)),               # Wo
                pl.BlockSpec((C, 1), lambda i: (0, 0)),               # bo
            ],
            out_specs=pl.BlockSpec((block_b, C, S), lambda i: (i, 0, 0)),
            scratch_shapes=[pltpu.VMEM((C, S), jnp.float32)],
        ),
        compiler_params=pltpu.CompilerParams(
            dimension_semantics=("parallel",),
            vmem_limit_bytes=32 * 1024 * 1024,
        ),
    )(x_cs, fused_params["wqkv"], fused_params["bqkv"],
      fused_params["wo"], fused_params["bo"])

    # TODO(synk): if S grows to the low thousands the per-head (S,S) f32 score
    # block must be tiled with a flash-style online softmax (KV grid axis +
    # pl.when init/finalize), especially on v7x's 64 MiB VMEM.
    return out_cs.reshape(B, C, H, W)


def _xavier_uniform(key, out_f, in_f):
    # Matches torch.nn.init.xavier_uniform_ for a (out, in) Linear weight.
    limit = (6.0 / (in_f + out_f)) ** 0.5
    return jax.random.uniform(key, (out_f, in_f), jnp.float32, -limit, limit)


def init_params(key, embed_size):
    k1, k2, k3, k4 = jax.random.split(key, 4)
    C = embed_size
    zeros = jnp.zeros((C,), jnp.float32)
    return {
        "wq": _xavier_uniform(k1, C, C), "bq": zeros,
        "wk": _xavier_uniform(k2, C, C), "bk": zeros,
        "wv": _xavier_uniform(k3, C, C), "bv": zeros,
        "wo": _xavier_uniform(k4, C, C), "bo": zeros,
    }


def _reference(x, params, *, num_heads):
    """Pure-JAX f32 reference mirroring the PyTorch forward, for a sanity check."""
    B, C, H, W = x.shape
    S = H * W
    hd = C // num_heads
    x_flat = jnp.transpose(x, (0, 2, 3, 1)).reshape(B, S, C)

    def lin(x_, w, b):
        return x_ @ w.T + b

    def split(t):
        return jnp.transpose(t.reshape(B, S, num_heads, hd), (0, 2, 1, 3))

    q = split(lin(x_flat, params["wq"], params["bq"]))
    k = split(lin(x_flat, params["wk"], params["bk"]))
    v = split(lin(x_flat, params["wv"], params["bv"]))
    w = jax.nn.softmax(q @ jnp.swapaxes(k, -2, -1) / (hd ** 0.5), axis=-1)
    a = jnp.transpose(w @ v, (0, 2, 1, 3)).reshape(B, H, W, C)
    a = lin(a, params["wo"], params["bo"])
    return jnp.transpose(a, (0, 3, 1, 2))


if __name__ == "__main__":
    embed_size, num_heads = 32, 4
    B, H, W = 2, 8, 8

    key = jax.random.PRNGKey(0)
    kx, kp = jax.random.split(key)
    x = jax.random.normal(kx, (B, embed_size, H, W), jnp.float32)
    params = init_params(kp, embed_size)

    fused = prepare_params(params, num_heads=num_heads)   # one-time, out of hot path
    fwd = jax.jit(functools.partial(multi_head_self_attention, num_heads=num_heads))

    out = jax.block_until_ready(fwd(x, fused))

    ref = _reference(x, params, num_heads=num_heads)
    assert out.shape == (B, embed_size, H, W)
    # bf16 projections + (possibly) bf16 exp + approx reciprocal -> relaxed tolerance.
    assert jnp.allclose(out, ref, atol=5e-2, rtol=5e-2), "mismatch vs reference"

    print("KERNEL_OK")
</pallas_src>

<mosaic_0001>
module attributes {stable_mosaic.version = 11 : i64} {
  func.func @_mhsa_kernel(%arg0: i32, %arg1: memref<1x32x64xf32, #tpu.memory_space<vmem>>, %arg2: memref<96x32xbf16, #tpu.memory_space<vmem>>, %arg3: memref<96x1xf32, #tpu.memory_space<vmem>>, %arg4: memref<32x32xbf16, #tpu.memory_space<vmem>>, %arg5: memref<32x1xf32, #tpu.memory_space<vmem>>, %arg6: memref<1x32x64xf32, #tpu.memory_space<vmem>>, %arg7: memref<32x64xf32, #tpu.memory_space<vmem>>) attributes {dimension_semantics = [#tpu.dimension_semantics<parallel>], iteration_bounds = array<i64: 2>, scalar_prefetch = 0 : i64, scratch_operands = 1 : i64, tpu.core_type = #tpu.core_type<tc>, window_params = [{transform_indices = @transform_0, window_bounds = array<i64: 1, 32, 64>}, {pipeline_mode = #tpu.pipeline_mode<synchronous>, transform_indices = @transform_1, window_bounds = array<i64: 96, 32>}, {pipeline_mode = #tpu.pipeline_mode<synchronous>, transform_indices = @transform_2, window_bounds = array<i64: 96, 1>}, {pipeline_mode = #tpu.pipeline_mode<synchronous>, transform_indices = @transform_3, window_bounds = array<i64: 32, 32>}, {pipeline_mode = #tpu.pipeline_mode<synchronous>, transform_indices = @transform_4, window_bounds = array<i64: 32, 1>}, {transform_indices = @transform_5, window_bounds = array<i64: 1, 32, 64>}]} {
    %c0 = arith.constant 0 : index
    %c0_0 = arith.constant 0 : index
    %c0_1 = arith.constant 0 : index
    %0 = vector.load %arg1[%c0, %c0_0, %c0_1] : memref<1x32x64xf32, #tpu.memory_space<vmem>>, vector<1x32x64xf32>
    %1 = vector.shape_cast %0 : vector<1x32x64xf32> to vector<32x64xf32>
    %2 = arith.truncf %1 : vector<32x64xf32> to vector<32x64xbf16>
    %c0_2 = arith.constant 0 : index
    %c0_3 = arith.constant 0 : index
    %3 = vector.load %arg2[%c0_2, %c0_3] : memref<96x32xbf16, #tpu.memory_space<vmem>>, vector<96x32xbf16>
    %cst = arith.constant dense<0.000000e+00> : vector<96x64xf32>
    %4 = tpu.matmul %3, %2, %cst {dimension_numbers = #tpu.dot_dimension_numbers<[1], [0], [0], [1], [0, 0, 1, 1], [], []>} : vector<96x32xbf16>, vector<32x64xbf16>, vector<96x64xf32> -> vector<96x64xf32>
    %c0_4 = arith.constant 0 : index
    %c0_5 = arith.constant 0 : index
    %5 = vector.load %arg3[%c0_4, %c0_5] : memref<96x1xf32, #tpu.memory_space<vmem>>, vector<96x1xf32>
    %6 = vector.broadcast %5 : vector<96x1xf32> to vector<96x64xf32>
    %7 = arith.addf %4, %6 : vector<96x64xf32>
    %8 = vector.extract_strided_slice %7 {offsets = [0, 0], sizes = [8, 64], strides = [1, 1]} : vector<96x64xf32> to vector<8x64xf32>
    %9 = vector.extract_strided_slice %7 {offsets = [32, 0], sizes = [8, 64], strides = [1, 1]} : vector<96x64xf32> to vector<8x64xf32>
    %10 = vector.extract_strided_slice %7 {offsets = [64, 0], sizes = [8, 64], strides = [1, 1]} : vector<96x64xf32> to vector<8x64xf32>
    %cst_6 = arith.constant dense<0.000000e+00> : vector<64x64xf32>
    %11 = tpu.matmul %8, %9, %cst_6 {dimension_numbers = #tpu.dot_dimension_numbers<[0], [0], [1], [1], [0, 1, 1, 1], [], []>} : vector<8x64xf32>, vector<8x64xf32>, vector<64x64xf32> -> vector<64x64xf32>
    %cst_7 = arith.constant dense<0xFF800000> : vector<64xf32>
    %12 = vector.multi_reduction <maximumf>, %11, %cst_7 [1] : vector<64x64xf32> to vector<64xf32>
    %13 = vector.shape_cast %12 : vector<64xf32> to vector<64x1xf32>
    %14 = vector.broadcast %13 : vector<64x1xf32> to vector<64x64xf32>
    %15 = arith.subf %11, %14 : vector<64x64xf32>
    %16 = arith.truncf %15 : vector<64x64xf32> to vector<64x64xbf16>
    %17 = math.exp %16 : vector<64x64xbf16>
    %18 = arith.extf %17 : vector<64x64xbf16> to vector<64x64xf32>
    %cst_8 = arith.constant dense<0.000000e+00> : vector<64xf32>
    %19 = vector.multi_reduction <add>, %18, %cst_8 [1] : vector<64x64xf32> to vector<64xf32>
    %20 = vector.shape_cast %19 : vector<64xf32> to vector<64x1xf32>
    %21 = tpu.reciprocal %20 {approx = true} : vector<64x1xf32> -> vector<64x1xf32>
    %22 = vector.broadcast %21 : vector<64x1xf32> to vector<64x64xf32>
    %23 = arith.mulf %18, %22 : vector<64x64xf32>
    %cst_9 = arith.constant dense<0.000000e+00> : vector<8x64xf32>
    %24 = tpu.matmul %10, %23, %cst_9 {dimension_numbers = #tpu.dot_dimension_numbers<[1], [1], [0], [0], [0, 0, 1, 0], [], []>} : vector<8x64xf32>, vector<64x64xf32>, vector<8x64xf32> -> vector<8x64xf32>
    %c0_10 = arith.constant 0 : index
    %c0_11 = arith.constant 0 : index
    %25 = vector.load %arg7[%c0_10, %c0_11] : memref<32x64xf32, #tpu.memory_space<vmem>>, vector<8x64xf32>
    tpu.vector_store %arg7[%c0_10, %c0_11], %24 {strides = array<i32>} : memref<32x64xf32, #tpu.memory_space<vmem>>, vector<8x64xf32>,
    %26 = vector.extract_strided_slice %7 {offsets = [8, 0], sizes = [8, 64], strides = [1, 1]} : vector<96x64xf32> to vector<8x64xf32>
    %27 = vector.extract_strided_slice %7 {offsets = [40, 0], sizes = [8, 64], strides = [1, 1]} : vector<96x64xf32> to vector<8x64xf32>
    %28 = vector.extract_strided_slice %7 {offsets = [72, 0], sizes = [8, 64], strides = [1, 1]} : vector<96x64xf32> to vector<8x64xf32>
    %cst_12 = arith.constant dense<0.000000e+00> : vector<64x64xf32>
    %29 = tpu.matmul %26, %27, %cst_12 {dimension_numbers = #tpu.dot_dimension_numbers<[0], [0], [1], [1], [0, 1, 1, 1], [], []>} : vector<8x64xf32>, vector<8x64xf32>, vector<64x64xf32> -> vector<64x64xf32>
    %cst_13 = arith.constant dense<0xFF800000> : vector<64xf32>
    %30 = vector.multi_reduction <maximumf>, %29, %cst_13 [1] : vector<64x64xf32> to vector<64xf32>
    %31 = vector.shape_cast %30 : vector<64xf32> to vector<64x1xf32>
    %32 = vector.broadcast %31 : vector<64x1xf32> to vector<64x64xf32>
    %33 = arith.subf %29, %32 : vector<64x64xf32>
    %34 = arith.truncf %33 : vector<64x64xf32> to vector<64x64xbf16>
    %35 = math.exp %34 : vector<64x64xbf16>
    %36 = arith.extf %35 : vector<64x64xbf16> to vector<64x64xf32>
    %cst_14 = arith.constant dense<0.000000e+00> : vector<64xf32>
    %37 = vector.multi_reduction <add>, %36, %cst_14 [1] : vector<64x64xf32> to vector<64xf32>
    %38 = vector.shape_cast %37 : vector<64xf32> to vector<64x1xf32>
    %39 = tpu.reciprocal %38 {approx = true} : vector<64x1xf32> -> vector<64x1xf32>
    %40 = vector.broadcast %39 : vector<64x1xf32> to vector<64x64xf32>
    %41 = arith.mulf %36, %40 : vector<64x64xf32>
    %cst_15 = arith.constant dense<0.000000e+00> : vector<8x64xf32>
    %42 = tpu.matmul %28, %41, %cst_15 {dimension_numbers = #tpu.dot_dimension_numbers<[1], [1], [0], [0], [0, 0, 1, 0], [], []>} : vector<8x64xf32>, vector<64x64xf32>, vector<8x64xf32> -> vector<8x64xf32>
    %c8 = arith.constant 8 : index
    %c0_16 = arith.constant 0 : index
    %43 = vector.load %arg7[%c8, %c0_16] : memref<32x64xf32, #tpu.memory_space<vmem>>, vector<8x64xf32>
    tpu.vector_store %arg7[%c8, %c0_16], %42 {strides = array<i32>} : memref<32x64xf32, #tpu.memory_space<vmem>>, vector<8x64xf32>,
    %44 = vector.extract_strided_slice %7 {offsets = [16, 0], sizes = [8, 64], strides = [1, 1]} : vector<96x64xf32> to vector<8x64xf32>
    %45 = vector.extract_strided_slice %7 {offsets = [48, 0], sizes = [8, 64], strides = [1, 1]} : vector<96x64xf32> to vector<8x64xf32>
    %46 = vector.extract_strided_slice %7 {offsets = [80, 0], sizes = [8, 64], strides = [1, 1]} : vector<96x64xf32> to vector<8x64xf32>
    %cst_17 = arith.constant dense<0.000000e+00> : vector<64x64xf32>
    %47 = tpu.matmul %44, %45, %cst_17 {dimension_numbers = #tpu.dot_dimension_numbers<[0], [0], [1], [1], [0, 1, 1, 1], [], []>} : vector<8x64xf32>, vector<8x64xf32>, vector<64x64xf32> -> vector<64x64xf32>
    %cst_18 = arith.constant dense<0xFF800000> : vector<64xf32>
    %48 = vector.multi_reduction <maximumf>, %47, %cst_18 [1] : vector<64x64xf32> to vector<64xf32>
    %49 = vector.shape_cast %48 : vector<64xf32> to vector<64x1xf32>
    %50 = vector.broadcast %49 : vector<64x1xf32> to vector<64x64xf32>
    %51 = arith.subf %47, %50 : vector<64x64xf32>
    %52 = arith.truncf %51 : vector<64x64xf32> to vector<64x64xbf16>
    %53 = math.exp %52 : vector<64x64xbf16>
    %54 = arith.extf %53 : vector<64x64xbf16> to vector<64x64xf32>
    %cst_19 = arith.constant dense<0.000000e+00> : vector<64xf32>
    %55 = vector.multi_reduction <add>, %54, %cst_19 [1] : vector<64x64xf32> to vector<64xf32>
    %56 = vector.shape_cast %55 : vector<64xf32> to vector<64x1xf32>
    %57 = tpu.reciprocal %56 {approx = true} : vector<64x1xf32> -> vector<64x1xf32>
    %58 = vector.broadcast %57 : vector<64x1xf32> to vector<64x64xf32>
    %59 = arith.mulf %54, %58 : vector<64x64xf32>
    %cst_20 = arith.constant dense<0.000000e+00> : vector<8x64xf32>
    %60 = tpu.matmul %46, %59, %cst_20 {dimension_numbers = #tpu.dot_dimension_numbers<[1], [1], [0], [0], [0, 0, 1, 0], [], []>} : vector<8x64xf32>, vector<64x64xf32>, vector<8x64xf32> -> vector<8x64xf32>
    %c16 = arith.constant 16 : index
    %c0_21 = arith.constant 0 : index
    %61 = vector.load %arg7[%c16, %c0_21] : memref<32x64xf32, #tpu.memory_space<vmem>>, vector<8x64xf32>
    tpu.vector_store %arg7[%c16, %c0_21], %60 {strides = array<i32>} : memref<32x64xf32, #tpu.memory_space<vmem>>, vector<8x64xf32>,
    %62 = vector.extract_strided_slice %7 {offsets = [24, 0], sizes = [8, 64], strides = [1, 1]} : vector<96x64xf32> to vector<8x64xf32>
    %63 = vector.extract_strided_slice %7 {offsets = [56, 0], sizes = [8, 64], strides = [1, 1]} : vector<96x64xf32> to vector<8x64xf32>
    %64 = vector.extract_strided_slice %7 {offsets = [88, 0], sizes = [8, 64], strides = [1, 1]} : vector<96x64xf32> to vector<8x64xf32>
    %cst_22 = arith.constant dense<0.000000e+00> : vector<64x64xf32>
    %65 = tpu.matmul %62, %63, %cst_22 {dimension_numbers = #tpu.dot_dimension_numbers<[0], [0], [1], [1], [0, 1, 1, 1], [], []>} : vector<8x64xf32>, vector<8x64xf32>, vector<64x64xf32> -> vector<64x64xf32>
    %cst_23 = arith.constant dense<0xFF800000> : vector<64xf32>
    %66 = vector.multi_reduction <maximumf>, %65, %cst_23 [1] : vector<64x64xf32> to vector<64xf32>
    %67 = vector.shape_cast %66 : vector<64xf32> to vector<64x1xf32>
    %68 = vector.broadcast %67 : vector<64x1xf32> to vector<64x64xf32>
    %69 = arith.subf %65, %68 : vector<64x64xf32>
    %70 = arith.truncf %69 : vector<64x64xf32> to vector<64x64xbf16>
    %71 = math.exp %70 : vector<64x64xbf16>
    %72 = arith.extf %71 : vector<64x64xbf16> to vector<64x64xf32>
    %cst_24 = arith.constant dense<0.000000e+00> : vector<64xf32>
    %73 = vector.multi_reduction <add>, %72, %cst_24 [1] : vector<64x64xf32> to vector<64xf32>
    %74 = vector.shape_cast %73 : vector<64xf32> to vector<64x1xf32>
    %75 = tpu.reciprocal %74 {approx = true} : vector<64x1xf32> -> vector<64x1xf32>
    %76 = vector.broadcast %75 : vector<64x1xf32> to vector<64x64xf32>
    %77 = arith.mulf %72, %76 : vector<64x64xf32>
    %cst_25 = arith.constant dense<0.000000e+00> : vector<8x64xf32>
    %78 = tpu.matmul %64, %77, %cst_25 {dimension_numbers = #tpu.dot_dimension_numbers<[1], [1], [0], [0], [0, 0, 1, 0], [], []>} : vector<8x64xf32>, vector<64x64xf32>, vector<8x64xf32> -> vector<8x64xf32>
    %c24 = arith.constant 24 : index
    %c0_26 = arith.constant 0 : index
    %79 = vector.load %arg7[%c24, %c0_26] : memref<32x64xf32, #tpu.memory_space<vmem>>, vector<8x64xf32>
    tpu.vector_store %arg7[%c24, %c0_26], %78 {strides = array<i32>} : memref<32x64xf32, #tpu.memory_space<vmem>>, vector<8x64xf32>,
    %c0_27 = arith.constant 0 : index
    %c0_28 = arith.constant 0 : index
    %80 = vector.load %arg4[%c0_27, %c0_28] : memref<32x32xbf16, #tpu.memory_space<vmem>>, vector<32x32xbf16>
    %c0_29 = arith.constant 0 : index
    %c0_30 = arith.constant 0 : index
    %81 = vector.load %arg7[%c0_29, %c0_30] : memref<32x64xf32, #tpu.memory_space<vmem>>, vector<32x64xf32>
    %82 = arith.truncf %81 : vector<32x64xf32> to vector<32x64xbf16>
    %cst_31 = arith.constant dense<0.000000e+00> : vector<32x64xf32>
    %83 = tpu.matmul %80, %82, %cst_31 {dimension_numbers = #tpu.dot_dimension_numbers<[1], [0], [0], [1], [0, 0, 1, 1], [], []>} : vector<32x32xbf16>, vector<32x64xbf16>, vector<32x64xf32> -> vector<32x64xf32>
    %c0_32 = arith.constant 0 : index
    %c0_33 = arith.constant 0 : index
    %84 = vector.load %arg5[%c0_32, %c0_33] : memref<32x1xf32, #tpu.memory_space<vmem>>, vector<32x1xf32>
    %85 = vector.broadcast %84 : vector<32x1xf32> to vector<32x64xf32>
    %86 = arith.addf %83, %85 : vector<32x64xf32>
    %c0_34 = arith.constant 0 : index
    %c0_35 = arith.constant 0 : index
    %c0_36 = arith.constant 0 : index
    %87 = vector.load %arg6[%c0_34, %c0_35, %c0_36] : memref<1x32x64xf32, #tpu.memory_space<vmem>>, vector<1x32x64xf32>
    %88 = vector.shape_cast %87 : vector<1x32x64xf32> to vector<32x64xf32>
    %89 = vector.shape_cast %86 : vector<32x64xf32> to vector<1x32x64xf32>
    tpu.vector_store %arg6[%c0_34, %c0_35, %c0_36], %89 {strides = array<i32>} : memref<1x32x64xf32, #tpu.memory_space<vmem>>, vector<1x32x64xf32>,
    return
  }
  func.func @transform_0(%arg0: i32) -> (i32, i32, i32) {
    %c0_i32 = arith.constant 0 : i32
    %c0_i32_0 = arith.constant 0 : i32
    %c0_i32_1 = arith.constant 0 : i32
    return %arg0, %c0_i32, %c0_i32_0 : i32, i32, i32
  }
  func.func @transform_1(%arg0: i32) -> (i32, i32) {
    %c0_i32 = arith.constant 0 : i32
    %c0_i32_0 = arith.constant 0 : i32
    %c0_i32_1 = arith.constant 0 : i32
    return %c0_i32, %c0_i32_0 : i32, i32
  }
  func.func @transform_2(%arg0: i32) -> (i32, i32) {
    %c0_i32 = arith.constant 0 : i32
    %c0_i32_0 = arith.constant 0 : i32
    %c0_i32_1 = arith.constant 0 : i32
    return %c0_i32, %c0_i32_0 : i32, i32
  }
  func.func @transform_3(%arg0: i32) -> (i32, i32) {
    %c0_i32 = arith.constant 0 : i32
    %c0_i32_0 = arith.constant 0 : i32
    %c0_i32_1 = arith.constant 0 : i32
    return %c0_i32, %c0_i32_0 : i32, i32
  }
  func.func @transform_4(%arg0: i32) -> (i32, i32) {
    %c0_i32 = arith.constant 0 : i32
    %c0_i32_0 = arith.constant 0 : i32
    %c0_i32_1 = arith.constant 0 : i32
    return %c0_i32, %c0_i32_0 : i32, i32
  }
  func.func @transform_5(%arg0: i32) -> (i32, i32, i32) {
    %c0_i32 = arith.constant 0 : i32
    %c0_i32_0 = arith.constant 0 : i32
    %c0_i32_1 = arith.constant 0 : i32
    return %arg0, %c0_i32, %c0_i32_0 : i32, i32, i32
  }
}

</mosaic_0001>

<bundles_post_ra>
// kernel: multi_head_self_attention.1
= control target key start
LH: loop header
LB: loop body
LE: loop exit
PB: predicated region body
PF: predicated region fallthrough
CT: control target
= control target key end

     0   :  { %s2587_s18 = smov 0   ;;  %s3076_s0 = inlined_call_operand.vmem [shape: f32[2,32,64], index: 0, kind: input, shape index: {}]   ;;  %s3077_s1 = inlined_call_operand.vmem [shape: bf16[96,32], index: 1, kind: input, shape index: {}]   ;;  %s3078_s2 = inlined_call_operand.vmem [shape: f32[96,1], index: 2, kind: input, shape index: {}]   ;;  %s3079_s3 = inlined_call_operand.vmem [shape: bf16[32,32], index: 3, kind: input, shape index: {}]   ;;  %s3080_s4 = inlined_call_operand.vmem [shape: f32[32,1], index: 4, kind: input, shape index: {}]   ;;  %s3081_s5 = inlined_call_operand.vmem [shape: f32[2,32,64], index: 5, kind: output, shape index: {}]  }
   0x1 LB: > { %s2026_s19 = sadd.s32 4294967295, %s2551_s18   ;;  %p2030_p0 = scmp.ge.s32.totalorder %s2551_s18, 1  ;;  %s2551_s18 = sphi %s2587_s18, %s15_s18  }
   0x2   : > { %p187_p1 = scmp.lt.s32.totalorder %s2551_s18, 3 }
   0x4   : > { %p188_p2 = pnand %p2030_p0, %p187_p1 }
   0x5   : > { %p215_p3 = scmp.lt.s32.totalorder (!%p188_p2), %s2026_s19, 1  ;;  %v2441_v0 = vld [vmem:[%s3077_s1] sm:$0xff] (!%p188_p2)   ;;  %vm346_vm0 = vcmask (!%p188_p2), 261120   ;;  %v2553_v1 = vmov (!%p188_p2), 0   ;;  %v2442_v10 = vld [vmem:[%s3077_s1 + $0x8] sm:$0xff] (!%p188_p2)   ;;  %v2443_v11 = vld [vmem:[%s3077_s1 + $0x10] sm:$0xff] (!%p188_p2)  }
   0x6   : > { %191 = sbr.rel (%p188_p2) target bundleno = 2750 (0xabe), region = 40  ;;  %2211 = vmatprep.mubr.msk.bf16.mxu0 (!%p188_p2), %vm346_vm0, %v2441_v0  ;;  %2439 = vset.pattern.permute.xlu0 (!%p188_p2), %v2553_v1  ;;  %v244_v2 = vld [vmem:[%s3078_s2] sm:$0xff] (!%p188_p2)  ;;  %v2444_v12 = vld [vmem:[%s3077_s1 + $0x18] sm:$0xff] (!%p188_p2)   ;;  %vm478_vm1 = vcmask (!%p188_p2), 64512   ;;  %vm608_vm2 = vcmask (!%p188_p2), 523264   ;;  %v2446_v45 = vld [vmem:[%s3077_s1 + $0x28] sm:$0xff] (!%p188_p2)  }
   0x7   : > { %v248_v3 = vld [vmem:[%s3078_s2 + $0x20] sm:$0xff] (!%p188_p2)  ;;  %258 = vperm.xlu0 (!%p188_p2), %2439, %v244_v2   ;;  %vm2555_vm3 = vmmov (!%p188_p2), 0   ;;  %vm2715_vm4 = vmpackc.low (!%p188_p2), %vm608_vm2, %vm608_vm2 }
   0x8   : > { %v2445_v44 = vld [vmem:[%s3077_s1 + $0x20] sm:$0xff] (!%p188_p2)  }
   0xb   : > { %278 = vperm.xlu0 (!%p188_p2), %2439, %v248_v3  }
   0xd   : > { %s3085_s19 = smov (!%p215_p3, %s2026_s19), 1 }
   0xe   : > { %s2121_s22 = sshll.u32 %s3085_s19, 5 }
   0xf   : > { %s219_s29 = scalar_lea.vmem %s3076_s0, %s2121_s22  ;;  %s224_s30 = scalar_lea.vmem %s3081_s5, %s2121_s22 }
  0x10   : > { %v226_v4 = vld [vmem:[%s219_s29] sm:$0xff]  ;;  %v227_v5 = vld [vmem:[%s219_s29 + $0x8] sm:$0xff]  ;;  %v228_v6 = vld [vmem:[%s219_s29 + $0x10] sm:$0xff] }
  0x11   : > { %v230_v7 = vpack.c.bf16 %v227_v5, %v226_v4  ;;  %v229_v8 = vld [vmem:[%s219_s29 + $0x18] sm:$0xff] }
  0x12   : > { %v231_v9 = vpack.c.bf16 %v229_v8, %v228_v6 }
  0x13   : > { %2207 = vmatprep.subr.bf16.mxu0 %v230_v7 }
  0x14   : > { %2208 = vmatpush3.bf16.msra.mxu0 %v230_v7 }
  0x15   : > { %2209 = vmatprep.subr.bf16.mxu0 %v231_v9 }
  0x18   : > { %2210 = vmatpush3.bf16.msra.mxu0 %v231_v9 }
  0x1b   : > { %2212 = vmatmul.mubr.msk.bf16.vlgmr.msra.gmra.mrb[0].mxu0 %vm346_vm0, %v2442_v10 }
  0x1c   : > { %2215 = vmatprep.mubr.msk.bf16.mxu0 %vm346_vm0, %v2443_v11 }
  0x23   : > { %2216 = vmatmul.mubr.msk.bf16.gmra.mrb[4].mxu0 %vm346_vm0, %v2444_v12 }
  0x24   : > { %2219 = vmatprep.mubr.msk.bf16.mxu0 %vm346_vm0, %v2445_v44 }
  0x2b   : > { %2220 = vmatmul.mubr.msk.bf16.gmra.mrb[8].mxu0 %vm346_vm0, %v2446_v45 }
  0x86   : > { %v259_v14 = vpop.permute.xlu0 %258 }
  0x8a   : > { %v279_v20 = vpop.permute.xlu0 %278 }
  0xee   : > { %v2625_v13 = vpop.f32.mrb[0].mxu0 }
  0xef   : > { %v399_v15 = vpop.f32.mrb[1].mxu0 }
  0xf0   : > { %v2627_v16 = vpop.f32.mrb[2].mxu0  ;;  %v400_v17 = vadd.f32 %v399_v15, %v259_v14 }
  0xf1   : > { %v2629_v18 = vpop.f32.mrb[3].mxu0 }
  0xf2   : > { %446 = vxpose.xlu1.b32.start.end [1/1] (short) (narrow) %v400_v17, 64 }
  0xf6   : > { %v2631_v19 = vpop.f32.mrb[4].mxu0 }
  0xf7   : > { %v415_v21 = vpop.f32.mrb[5].mxu0 }
  0xf8   : > { %v416_v22 = vadd.f32 %v415_v21, %v279_v20  ;;  %v2633_v23 = vpop.f32.mrb[6].mxu0 }
  0xf9   : > { %v2635_v24 = vpop.f32.mrb[7].mxu0 }
  0xfa   : > { %2223 = vmatprep.subr.mxu1 %v416_v22 }
  0xfb   : > { %2224 = vmatpush3.msra.mxu1 %v416_v22 }
 0x110   : > { %2440 = vset.pattern.permute.xlu1 %v2553_v1 }
 0x172   : > { %v462_v25 = vpop.trf.xlu1 }
 0x173   : > { %2225 = vmatprep.mubr.msk.f32.mxu1 %vm478_vm1, %v462_v25 }
 0x176   : > { %v463_v26 = vpop.trf.xlu1 }
 0x177   : > { %2226 = vmatmul.mubr.msk.f32.vlgmr.msra.gmra.mrb[0].mxu1 %vm478_vm1, %v463_v26 }
 0x17a   : > { %v464_v27 = vpop.trf.xlu1 }
 0x17b   : > { %2228 = vmatprep.mubr.msk.f32.mxu1 %vm478_vm1, %v464_v27 }
 0x17e   : > { %v465_v28 = vpop.trf.xlu1 }
 0x17f   : > { %2229 = vmatmul.mubr.msk.f32.gmra.mrb[2].mxu1 %vm478_vm1, %v465_v28 }
 0x182   : > { %v466_v29 = vpop.trf.xlu1 }
 0x183   : > { %2231 = vmatprep.mubr.msk.f32.mxu1 %vm478_vm1, %v466_v29 }
 0x186   : > { %v467_v30 = vpop.trf.xlu1 }
 0x187   : > { %2232 = vmatmul.mubr.msk.f32.gmra.mrb[4].mxu1 %vm478_vm1, %v467_v30 }
 0x18a   : > { %v468_v31 = vpop.trf.xlu1 }
 0x18b   : > { %2234 = vmatprep.mubr.msk.f32.mxu1 %vm478_vm1, %v468_v31 }
 0x18e   : > { %v469_v32 = vpop.trf.xlu1 }
 0x18f   : > { %2235 = vmatmul.mubr.msk.f32.gmra.mrb[6].mxu1 %vm478_vm1, %v469_v32 }
 0x24a   : > { %v2227_v33 = vpop.f32.mrb[0].mxu1 }
 0x24b   : > { %v569_v34 = vpop.f32.mrb[1].mxu1  ;;  %v612_v35 = vsel %vm608_vm2, %v2227_v33, -inf }
 0x24c   : > { %613 = vmax.xlane.f32.xlu0 %v612_v35  ;;  %v609_v36 = vsel %vm608_vm2, %v569_v34, -inf }
 0x24d   : > { %610 = vmax.xlane.f32.xlu1 %v609_v36 }
 0x252   : > { %v2230_v37 = vpop.f32.mrb[2].mxu1 }
 0x253   : > { %v579_v38 = vpop.f32.mrb[3].mxu1  ;;  %v618_v39 = vsel %vm608_vm2, %v2230_v37, -inf }
 0x254   : > { %619 = vmax.xlane.f32.xlu0 %v618_v39  ;;  %v615_v40 = vsel %vm608_vm2, %v579_v38, -inf  ;;  %v250_v39 = vld [vmem:[%s3078_s2 + $0x30] sm:$0xff] }
 0x258   : > { %616 = vmax.xlane.f32.xlu0 %v615_v40  ;;  %v252_v40 = vld [vmem:[%s3078_s2 + $0x40] sm:$0xff] }
 0x25a   : > { %v2233_v41 = vpop.f32.mrb[4].mxu1 }
 0x25b   : > { %v589_v42 = vpop.f32.mrb[5].mxu1  ;;  %v624_v43 = vsel %vm608_vm2, %v2233_v41, -inf }
 0x25c   : > { %625 = vmax.xlane.f32.xlu0 %v624_v43  ;;  %v621_v46 = vsel %vm608_vm2, %v589_v42, -inf }
 0x260   : > { %622 = vmax.xlane.f32.xlu0 %v621_v46 }
 0x262   : > { %v2236_v47 = vpop.f32.mrb[6].mxu1 }
 0x263   : > { %v599_v48 = vpop.f32.mrb[7].mxu1  ;;  %v630_v50 = vsel %vm608_vm2, %v2236_v47, -inf }
 0x264   : > { %v627_v49 = vsel %vm608_vm2, %v599_v48, -inf }
 0x265   : > { %628 = vmax.xlane.f32.xlu0 %v627_v49 }
 0x269   : > { %631 = vmax.xlane.f32.xlu0 %v630_v50 }
 0x2d9   : > { %v614_v51 = vpop.xlane.xlu0 %613 }
 0x2da   : > { %v634_v52 = vsub.f32 %v2227_v33, %v614_v51  ;;  %v611_v53 = vpop.xlane.xlu1 %610 }
 0x2db   : > { %v633_v54 = vsub.f32 %v569_v34, %v611_v53 }
 0x2dd   : > { %v641_v55 = vpack.c.bf16 %v634_v52, %v633_v54 }
 0x2df   : > { %v646_v56 = vmul.bf16 1069105081, %v641_v55 }
 0x2e1   : > { %2449 = vpow.bf16 %v646_v56  ;;  %v620_v57 = vpop.xlane.xlu0 %619 }
 0x2e2   : > { %v636_v59 = vsub.f32 %v2230_v37, %v620_v57  ;;  %v2554_v37 = vmov 0.0|0.0  }
 0x2e3   : > { %2363 = vmatprep.subr.bf16.mxu1 %v2554_v37 }
 0x2e5   : > { %v617_v58 = vpop.xlane.xlu0 %616 }
 0x2e6   : > { %v635_v60 = vsub.f32 %v579_v38, %v617_v58  ;;  %v246_v38 = vld [vmem:[%s3078_s2 + $0x10] sm:$0xff] }
 0x2e8   : > { %v642_v61 = vpack.c.bf16 %v636_v59, %v635_v60 }
 0x2e9   : > { %v626_v62 = vpop.xlane.xlu0 %625 }
 0x2ea   : > { %v649_v63 = vmul.bf16 1069105081, %v642_v61  ;;  %v638_v3 = vsub.f32 %v2233_v41, %v626_v62  ;;  %v2556_v41 = vmov 0.0  }
 0x2eb   : > { %2253 = vmatprep.mubr.msk.f32.mxu1 %vm2555_vm3, %v2556_v41 }
 0x2ec   : > { %v2661_v0 = vpop.eup %2449  ;;  %2451 = vpow.bf16 %v649_v63 }
 0x2ed   : > { %v623_v1 = vpop.xlane.xlu0 %622  ;;  %v657_v2 = vunpack.c.l.bf16 %v2661_v0  ;;  %v658_v6 = vunpack.c.h.bf16 %v2661_v0 }
 0x2ee   : > { %v637_v4 = vsub.f32 %v589_v42, %v623_v1  ;;  %v2705_v42 = vpop.f32.mrb[8].mxu0 }
 0x2ef   : > { %v665_v5 = vsel %vm608_vm2, %v657_v2, 0.0  ;;  %v668_v10 = vsel %vm608_vm2, %v658_v6, 0.0  ;;  %v431_v43 = vpop.f32.mrb[9].mxu0 }
 0x2f0   : > { %v643_v7 = vpack.c.bf16 %v638_v3, %v637_v4  ;;  %666 = vadd.xlane.f32.xlu0 %v665_v5  ;;  %v2707_v44 = vpop.f32.mrb[10].mxu0 }
 0x2f1   : > { %v2709_v45 = vpop.f32.mrb[11].mxu0 }
 0x2f2   : > { %v652_v8 = vmul.bf16 1069105081, %v643_v7  ;;  %v629_v9 = vpop.xlane.xlu0 %628 }
 0x2f3   : > { %v639_v14 = vsub.f32 %v599_v48, %v629_v9 }
 0x2f4   : > { %2453 = vpow.bf16 %v652_v8  ;;  %669 = vadd.xlane.f32.xlu0 %v668_v10 }
 0x2f6   : > { %v632_v11 = vpop.xlane.xlu0 %631 }
 0x2f7   : > { %v2669_v12 = vpop.eup %2451  ;;  %v640_v15 = vsub.f32 %v2236_v47, %v632_v11 }
 0x2f8   : > { %v660_v17 = vunpack.c.h.bf16 %v2669_v12  ;;  %v659_v20 = vunpack.c.l.bf16 %v2669_v12 }
 0x2f9   : > { %v644_v21 = vpack.c.bf16 %v640_v15, %v639_v14 }
 0x2fa   : > { %v674_v22 = vsel %vm608_vm2, %v660_v17, 0.0  ;;  %v671_v25 = vsel %vm608_vm2, %v659_v20, 0.0 }
 0x2fb   : > { %v655_v26 = vmul.bf16 1069105081, %v644_v21  ;;  %675 = vadd.xlane.f32.xlu1 %v674_v22  ;;  %672 = vadd.xlane.f32.xlu0 %v671_v25 }
 0x2fd   : > { %2455 = vpow.bf16 %v655_v26 }
 0x2ff   : > { %v2675_v27 = vpop.eup %2453 }
 0x300   : > { %v662_v28 = vunpack.c.h.bf16 %v2675_v27  ;;  %v661_v29 = vunpack.c.l.bf16 %v2675_v27 }
 0x302   : > { %v680_v30 = vsel %vm608_vm2, %v662_v28, 0.0  ;;  %v677_v31 = vsel %vm608_vm2, %v661_v29, 0.0 }
 0x303   : > { %681 = vadd.xlane.f32.xlu1 %v680_v30  ;;  %678 = vadd.xlane.f32.xlu0 %v677_v31 }
 0x308   : > { %v2683_v32 = vpop.eup %2455 }
 0x309   : > { %v663_v33 = vunpack.c.l.bf16 %v2683_v32  ;;  %v664_v35 = vunpack.c.h.bf16 %v2683_v32 }
 0x30b   : > { %v683_v34 = vsel %vm608_vm2, %v663_v33, 0.0  ;;  %v686_v36 = vsel %vm608_vm2, %v664_v35, 0.0 }
 0x30c   : > { %684 = vadd.xlane.f32.xlu1 %v683_v34 }
 0x310   : > { %687 = vadd.xlane.f32.xlu1 %v686_v36 }
 0x319   : > { %268 = vperm.xlu0 %2439, %v246_v38  }
 0x31d   : > { %288 = vperm.xlu0 %2439, %v250_v39  }
 0x321   : > { %298 = vperm.xlu1 %2440, %v252_v40  }
 0x37d   : > { %v667_v46 = vpop.xlane.xlu0 %666 }
 0x37e   : > { %2457 = vrcp.f32 %v667_v46 }
 0x381   : > { %v670_v47 = vpop.xlane.xlu0 %669 }
 0x382   : > { %2459 = vrcp.f32 %v670_v47 }
 0x388   : > { %v673_v48 = vpop.xlane.xlu0 %672  ;;  %v676_v49 = vpop.xlane.xlu1 %675 }
 0x389   : > { %2461 = vrcp.f32 %v673_v48  ;;  %v2458_v50 = vpop.eup %2457 }
 0x38a   : > { %2463 = vrcp.f32 %v676_v49  ;;  %v697_v52 = vmul.f32 %v2458_v50, %v657_v2 }
 0x38c   : > { %v2460_v51 = vpop.eup %2459 }
 0x38d   : > { %v698_v53 = vmul.f32 %v2460_v51, %v658_v6 }
 0x38f   : > { %v2364_v55 = vpack.c.bf16 %v698_v53, %v697_v52  ;;  %v245_v52 = vld [vmem:[%s3078_s2 + $0x8] sm:$0xff] }
 0x390   : > { %v679_v56 = vpop.xlane.xlu0 %678  ;;  %v682_v57 = vpop.xlane.xlu1 %681 }
 0x391   : > { %2465 = vrcp.f32 %v679_v56  ;;  %2366 = vmatpush3.bf16.xpose.msk.msra.mxu1 %vm2715_vm4, %v2364_v55 }
 0x392   : > { %2467 = vrcp.f32 %v682_v57  ;;  %2367 = vmatprep.subr.bf16.mxu1 %v2554_v37 }
 0x393   : > { %v2462_v58 = vpop.eup %2461 }
 0x394   : > { %v2464_v59 = vpop.eup %2463  ;;  %v699_v60 = vmul.f32 %v2462_v58, %v659_v20 }
 0x395   : > { %v700_v61 = vmul.f32 %v2464_v59, %v660_v17 }
 0x397   : > { %v2368_v62 = vpack.c.bf16 %v700_v61, %v699_v60 }
 0x398   : > { %v269_v63 = vpop.permute.xlu0 %268 }
 0x399   : > { %v408_v0 = vadd.f32 %v2625_v13, %v269_v63  ;;  %2370 = vmatpush3.bf16.xpose.msk.msra.mxu1 %vm2715_vm4, %v2368_v62  ;;  %v685_v1 = vpop.xlane.xlu1 %684 }
 0x39a   : > { %2371 = vmatprep.subr.bf16.mxu1 %v2554_v37  ;;  %2469 = vrcp.f32 %v685_v1 }
 0x39b   : > { %v2466_v2 = vpop.eup %2465  ;;  %1158 = vxpose.xlu1.b32.start.end [1/1] (short) (narrow) %v408_v0, 64 }
 0x39c   : > { %v2468_v3 = vpop.eup %2467  ;;  %v701_v4 = vmul.f32 %v2466_v2, %v661_v29  ;;  %v289_v10 = vpop.permute.xlu0 %288 }
 0x39d   : > { %v702_v5 = vmul.f32 %v2468_v3, %v662_v28  ;;  %v688_v6 = vpop.xlane.xlu1 %687  ;;  %v424_v14 = vadd.f32 %v2631_v19, %v289_v10 }
 0x39e   : > { %2471 = vrcp.f32 %v688_v6 }
 0x39f   : > { %v2372_v7 = vpack.c.bf16 %v702_v5, %v701_v4 }
 0x3a1   : > { %2374 = vmatpush3.bf16.xpose.msk.msra.mxu1 %vm2715_vm4, %v2372_v7  ;;  %v299_v15 = vpop.permute.xlu1 %298 }
 0x3a2   : > { %2375 = vmatprep.subr.bf16.mxu1 %v2554_v37  ;;  %v432_v17 = vadd.f32 %v431_v43, %v299_v15 }
 0x3a4   : > { %v2470_v13 = vpop.eup %2469 }
 0x3a5   : > { %v703_v9 = vmul.f32 %v2470_v13, %v663_v33 }
 0x3a8   : > { %v2472_v8 = vpop.eup %2471 }
 0x3a9   : > { %v704_v11 = vmul.f32 %v2472_v8, %v664_v35 }
 0x3ab   : > { %v2376_v12 = vpack.c.bf16 %v704_v11, %v703_v9 }
 0x3ad   : > { %2378 = vmatpush3.bf16.xpose.msk.msra.mxu1 %vm2715_vm4, %v2376_v12 }
 0x3ae   : > { %2289 = vmatprep.subr.mxu1 %v424_v14 }
 0x3b4   : > { %2254 = vmatmul.mubr.msk.f32.vlgmr.msra.gmra.mrb[8].mxu1 %vm608_vm2, %v432_v17 }
 0x3b5   : > { %2290 = vmatpush3.msra.mxu1 %v424_v14 }
 0x3b6   : > { %2395 = vmatprep.subr.bf16.mxu1 %v2554_v37 }
 0x41b   : > { %v1174_v20 = vpop.trf.xlu1 }
 0x41c   : > { %2291 = vmatprep.mubr.msk.f32.mxu1 %vm478_vm1, %v1174_v20 }
 0x41f   : > { %v1175_v21 = vpop.trf.xlu1 }
 0x420   : > { %2292 = vmatmul.mubr.msk.f32.vlgmr.msra.gmra.mrb[10].mxu1 %vm478_vm1, %v1175_v21 }
 0x423   : > { %v1176_v22 = vpop.trf.xlu1 }
 0x424   : > { %2294 = vmatprep.mubr.msk.f32.mxu1 %vm478_vm1, %v1176_v22 }
 0x427   : > { %v1177_v19 = vpop.trf.xlu1 }
 0x428   : > { %2295 = vmatmul.mubr.msk.f32.gmra.mrb[12].mxu1 %vm478_vm1, %v1177_v19  ;;  %v249_v19 = vld [vmem:[%s3078_s2 + $0x28] sm:$0xff] }
 0x42b   : > { %v1178_v25 = vpop.trf.xlu1 }
 0x42c   : > { %2297 = vmatprep.mubr.msk.f32.mxu1 %vm478_vm1, %v1178_v25  ;;  %v247_v25 = vld [vmem:[%s3078_s2 + $0x18] sm:$0xff] }
 0x42f   : > { %v1179_v26 = vpop.trf.xlu1 }
 0x430   : > { %2298 = vmatmul.mubr.msk.f32.gmra.mrb[14].mxu1 %vm478_vm1, %v1179_v26 }
 0x433   : > { %v1180_v27 = vpop.trf.xlu1 }
 0x434   : > { %2300 = vmatprep.mubr.msk.f32.mxu1 %vm478_vm1, %v1180_v27 }
 0x437   : > { %v1181_v28 = vpop.trf.xlu1 }
 0x438   : > { %2301 = vmatmul.mubr.msk.f32.gmra.mrb[16].mxu1 %vm478_vm1, %v1181_v28 }
 0x439   : > { %2319 = vmatprep.mubr.msk.f32.mxu1 %vm2555_vm3, %v2556_v41 }
 0x487   : > { %v798_v29 = vpop.f32.mrb[8].mxu1 }
 0x488   : > { %802 = vst.msk [vmem:[#allocation2] sm:$0xff] %vm608_vm2, %v798_v29  ;;  %v2255_v30 = vpop.f32.mrb[9].mxu1 }
 0x4f3   : > { %v2293_v31 = vpop.f32.mrb[10].mxu1 }
 0x4f4   : > { %v1280_v32 = vpop.f32.mrb[11].mxu1  ;;  %v1322_v33 = vsel %vm608_vm2, %v2293_v31, -inf }
 0x4f5   : > { %1323 = vmax.xlane.f32.xlu0 %v1322_v33  ;;  %v1319_v34 = vsel %vm608_vm2, %v1280_v32, -inf }
 0x4f9   : > { %1320 = vmax.xlane.f32.xlu0 %v1319_v34 }
 0x4fb   : > { %v2296_v35 = vpop.f32.mrb[12].mxu1 }
 0x4fc   : > { %v1290_v36 = vpop.f32.mrb[13].mxu1  ;;  %v1328_v38 = vsel %vm608_vm2, %v2296_v35, -inf }
 0x4fd   : > { %1329 = vmax.xlane.f32.xlu0 %v1328_v38  ;;  %v1325_v39 = vsel %vm608_vm2, %v1290_v36, -inf }
 0x501   : > { %1326 = vmax.xlane.f32.xlu0 %v1325_v39 }
 0x503   : > { %v2299_v40 = vpop.f32.mrb[14].mxu1 }
 0x504   : > { %v1300_v43 = vpop.f32.mrb[15].mxu1  ;;  %v1334_v46 = vsel %vm608_vm2, %v2299_v40, -inf }
 0x505   : > { %1335 = vmax.xlane.f32.xlu0 %v1334_v46  ;;  %v1331_v47 = vsel %vm608_vm2, %v1300_v43, -inf  ;;  %v254_v46 = vld [vmem:[%s3078_s2 + $0x50] sm:$0xff] }
 0x506   : > { %1332 = vmax.xlane.f32.xlu1 %v1331_v47 }
 0x50b   : > { %v2302_v48 = vpop.f32.mrb[16].mxu1 }
 0x50c   : > { %v1340_v49 = vsel %vm608_vm2, %v2302_v48, -inf  ;;  %v1310_v50 = vpop.f32.mrb[17].mxu1 }
 0x50d   : > { %1341 = vmax.xlane.f32.xlu0 %v1340_v49  ;;  %v1337_v51 = vsel %vm608_vm2, %v1310_v50, -inf }
 0x511   : > { %1338 = vmax.xlane.f32.xlu0 %v1337_v51 }
 0x527   : > { %263 = vperm.xlu0 %2439, %v245_v52  }
 0x582   : > { %v1324_v53 = vpop.xlane.xlu0 %1323 }
 0x583   : > { %v1344_v56 = vsub.f32 %v2293_v31, %v1324_v53 }
 0x586   : > { %v1321_v55 = vpop.xlane.xlu0 %1320 }
 0x587   : > { %v1343_v57 = vsub.f32 %v1280_v32, %v1321_v55 }
 0x589   : > { %v1351_v58 = vpack.c.bf16 %v1344_v56, %v1343_v57 }
 0x58a   : > { %v1330_v59 = vpop.xlane.xlu0 %1329 }
 0x58b   : > { %v1356_v60 = vmul.bf16 1069105081, %v1351_v58  ;;  %v1346_v62 = vsub.f32 %v2296_v35, %v1330_v59 }
 0x58d   : > { %2473 = vpow.bf16 %v1356_v60 }
 0x58e   : > { %v1327_v61 = vpop.xlane.xlu0 %1326 }
 0x58f   : > { %v1345_v63 = vsub.f32 %v1290_v36, %v1327_v61 }
 0x591   : > { %v1352_v0 = vpack.c.bf16 %v1346_v62, %v1345_v63 }
 0x592   : > { %v1336_v1 = vpop.xlane.xlu0 %1335 }
 0x593   : > { %v1359_v2 = vmul.bf16 1069105081, %v1352_v0  ;;  %v1348_v3 = vsub.f32 %v2299_v40, %v1336_v1  ;;  %v1333_v4 = vpop.xlane.xlu1 %1332 }
 0x594   : > { %v1347_v5 = vsub.f32 %v1300_v43, %v1333_v4  ;;  %v251_v43 = vld [vmem:[%s3078_s2 + $0x38] sm:$0xff] }
 0x595   : > { %2475 = vpow.bf16 %v1359_v2 }
 0x596   : > { %v1353_v6 = vpack.c.bf16 %v1348_v3, %v1347_v5 }
 0x598   : > { %v2474_v7 = vpop.eup %2473  ;;  %v1362_v26 = vmul.bf16 1069105081, %v1353_v6 }
 0x599   : > { %v1368_v13 = vunpack.c.h.bf16 %v2474_v7  ;;  %v1367_v8 = vunpack.c.l.bf16 %v2474_v7 }
 0x59a   : > { %v1342_v9 = vpop.xlane.xlu0 %1341  ;;  %2477 = vpow.bf16 %v1362_v26 }
 0x59b   : > { %v1378_v10 = vsel %vm608_vm2, %v1368_v13, 0.0  ;;  %v1375_v11 = vsel %vm608_vm2, %v1367_v8, 0.0  ;;  %v1350_v14 = vsub.f32 %v2302_v48, %v1342_v9 }
 0x59c   : > { %1379 = vadd.xlane.f32.xlu1 %v1378_v10  ;;  %1376 = vadd.xlane.f32.xlu0 %v1375_v11 }
 0x59e   : > { %v1339_v12 = vpop.xlane.xlu0 %1338 }
 0x59f   : > { %v1349_v15 = vsub.f32 %v1310_v50, %v1339_v12 }
 0x5a0   : > { %v2764_v17 = vpop.eup %2475 }
 0x5a1   : > { %v1354_v20 = vpack.c.bf16 %v1350_v14, %v1349_v15  ;;  %v1369_v21 = vunpack.c.l.bf16 %v2764_v17  ;;  %v1370_v28 = vunpack.c.h.bf16 %v2764_v17 }
 0x5a3   : > { %v1381_v22 = vsel %vm608_vm2, %v1369_v21, 0.0  ;;  %v1365_v27 = vmul.bf16 1069105081, %v1354_v20  ;;  %v1384_v30 = vsel %vm608_vm2, %v1370_v28, 0.0 }
 0x5a4   : > { %1382 = vadd.xlane.f32.xlu0 %v1381_v22 }
 0x5a5   : > { %2479 = vpow.bf16 %v1365_v27  ;;  %v2777_v29 = vpop.eup %2477 }
 0x5a6   : > { %v1372_v31 = vunpack.c.h.bf16 %v2777_v29  ;;  %v1371_v35 = vunpack.c.l.bf16 %v2777_v29  ;;  %v264_v47 = vpop.permute.xlu0 %263 }
 0x5a7   : > { %v403_v48 = vadd.f32 %v2629_v18, %v264_v47 }
 0x5a8   : > { %v1390_v33 = vsel %vm608_vm2, %v1372_v31, 0.0  ;;  %v1387_v38 = vsel %vm608_vm2, %v1371_v35, 0.0 }
 0x5ad   : > { %283 = vperm.xlu1 %2440, %v249_v19  }
 0x5b0   : > { %v2781_v32 = vpop.eup %2479 }
 0x5b1   : > { %v1373_v34 = vunpack.c.l.bf16 %v2781_v32  ;;  %v1374_v39 = vunpack.c.h.bf16 %v2781_v32 }
 0x5b3   : > { %v1393_v36 = vsel %vm608_vm2, %v1373_v34, 0.0  ;;  %v1396_v40 = vsel %vm608_vm2, %v1374_v39, 0.0 }
 0x5ba   : > { %273 = vperm.xlu0 %2439, %v247_v25  }
 0x5d1   : > { %1385 = vadd.xlane.f32.xlu1 %v1384_v30 }
 0x5d5   : > { %1391 = vadd.xlane.f32.xlu1 %v1390_v33 }
 0x5d9   : > { %1394 = vadd.xlane.f32.xlu1 %v1393_v36  ;;  %1388 = vadd.xlane.f32.xlu0 %v1387_v38 }
 0x5dd   : > { %1397 = vadd.xlane.f32.xlu0 %v1396_v40 }
 0x5ea   : > { %293 = vperm.xlu1 %2440, %v251_v43  }
 0x5f3   : > { %308 = vperm.xlu0 %2439, %v254_v46  }
 0x613   : > { %803 = vxpose.xlu1.b32.start.end [1/1] (short) (narrow) %v403_v48, 64 }
 0x629   : > { %v1377_v49 = vpop.xlane.xlu0 %1376  ;;  %v1380_v50 = vpop.xlane.xlu1 %1379 }
 0x62a   : > { %2481 = vrcp.f32 %v1377_v49 }
 0x62b   : > { %2483 = vrcp.f32 %v1380_v50 }
 0x62d   : > { %v284_v51 = vpop.permute.xlu1 %283 }
 0x62e   : > { %v419_v52 = vadd.f32 %v2635_v24, %v284_v51 }
 0x630   : > { %2256 = vmatprep.subr.mxu0 %v419_v52 }
 0x631   : > { %2257 = vmatpush3.msra.mxu0 %v419_v52  ;;  %v1383_v57 = vpop.xlane.xlu0 %1382 }
 0x632   : > { %2379 = vmatprep.subr.bf16.mxu0 %v2554_v37  ;;  %2485 = vrcp.f32 %v1383_v57 }
 0x634   : > { %v2482_v53 = vpop.eup %2481 }
 0x635   : > { %v2484_v55 = vpop.eup %2483  ;;  %v1407_v56 = vmul.f32 %v2482_v53, %v1367_v8 }
 0x636   : > { %v1408_v58 = vmul.f32 %v2484_v55, %v1368_v13 }
 0x638   : > { %v2396_v59 = vpack.c.bf16 %v1408_v58, %v1407_v56 }
 0x639   : > { %v274_v60 = vpop.permute.xlu0 %273 }
 0x63a   : > { %v411_v18 = vadd.f32 %v2627_v16, %v274_v60  ;;  %2398 = vmatpush3.bf16.xpose.msk.msra.mxu1 %vm2715_vm4, %v2396_v59 }
 0x63b   : > { %2399 = vmatprep.subr.bf16.mxu1 %v2554_v37 }
 0x63c   : > { %1513 = vxpose.xlu0.b32.start.end [1/1] (short) (narrow) %v411_v18, 64  ;;  %v2486_v63 = vpop.eup %2485 }
 0x63d   : > { %v1409_v1 = vmul.f32 %v2486_v63, %v1369_v21 }
 0x65e   : > { %v1386_v24 = vpop.xlane.xlu1 %1385 }
 0x65f   : > { %2487 = vrcp.f32 %v1386_v24 }
 0x662   : > { %v1392_v61 = vpop.xlane.xlu1 %1391 }
 0x663   : > { %2489 = vrcp.f32 %v1392_v61 }
 0x666   : > { %v1389_v62 = vpop.xlane.xlu0 %1388  ;;  %v1395_v16 = vpop.xlane.xlu1 %1394 }
 0x667   : > { %2491 = vrcp.f32 %v1389_v62 }
 0x669   : > { %v2488_v0 = vpop.eup %2487 }
 0x66a   : > { %v1410_v2 = vmul.f32 %v2488_v0, %v1370_v28  ;;  %v1398_v3 = vpop.xlane.xlu0 %1397  ;;  %v294_v14 = vpop.permute.xlu1 %293 }
 0x66b   : > { %2493 = vrcp.f32 %v1398_v3  ;;  %v427_v17 = vadd.f32 %v2633_v23, %v294_v14 }
 0x66c   : > { %v2400_v4 = vpack.c.bf16 %v1410_v2, %v1409_v1  ;;  %2495 = vrcp.f32 %v1395_v16 }
 0x66d   : > { %v2490_v5 = vpop.eup %2489 }
 0x66e   : > { %2402 = vmatpush3.bf16.xpose.msk.msra.mxu1 %vm2715_vm4, %v2400_v4  ;;  %v1412_v7 = vmul.f32 %v2490_v5, %v1372_v31 }
 0x66f   : > { %2403 = vmatprep.subr.bf16.mxu1 %v2554_v37 }
 0x671   : > { %v2492_v6 = vpop.eup %2491 }
 0x672   : > { %v1411_v13 = vmul.f32 %v2492_v6, %v1371_v35  ;;  %v309_v20 = vpop.permute.xlu0 %308 }
 0x673   : > { %v440_v21 = vadd.f32 %v2705_v42, %v309_v20 }
 0x674   : > { %v2404_v8 = vpack.c.bf16 %v1412_v7, %v1411_v13 }
 0x675   : > { %v2494_v9 = vpop.eup %2493 }
 0x676   : > { %2406 = vmatpush3.bf16.xpose.msk.msra.mxu1 %vm2715_vm4, %v2404_v8  ;;  %v2496_v10 = vpop.eup %2495  ;;  %v1414_v11 = vmul.f32 %v2494_v9, %v1374_v39 }
 0x677   : > { %2407 = vmatprep.subr.bf16.mxu1 %v2554_v37  ;;  %v1413_v12 = vmul.f32 %v2496_v10, %v1373_v34 }
 0x679   : > { %v2408_v15 = vpack.c.bf16 %v1414_v11, %v1413_v12 }
 0x67e   : > { %2410 = vmatpush3.bf16.xpose.msk.msra.mxu1 %vm2715_vm4, %v2408_v15 }
 0x67f   : > { %2322 = vmatprep.subr.mxu1 %v427_v17 }
 0x685   : > { %2320 = vmatmul.mubr.msk.f32.vlgmr.msra.gmra.mrb[18].mxu1 %vm608_vm2, %v440_v21 }
 0x686   : > { %2323 = vmatpush3.msra.mxu1 %v427_v17 }
 0x693   : > { %v819_v22 = vpop.trf.xlu1 }
 0x694   : > { %2258 = vmatprep.mubr.msk.f32.mxu0 %vm478_vm1, %v819_v22 }
 0x697   : > { %v820_v19 = vpop.trf.xlu1 }
 0x698   : > { %2259 = vmatmul.mubr.msk.f32.vlgmr.msra.gmra.mrb[12].mxu0 %vm478_vm1, %v820_v19 }
 0x69b   : > { %v821_v25 = vpop.trf.xlu1 }
 0x69c   : > { %2261 = vmatprep.mubr.msk.f32.mxu0 %vm478_vm1, %v821_v25 }
 0x69f   : > { %v822_v23 = vpop.trf.xlu1 }
 0x6a0   : > { %2262 = vmatmul.mubr.msk.f32.gmra.mrb[14].mxu0 %vm478_vm1, %v822_v23 }
 0x6a3   : > { %v823_v26 = vpop.trf.xlu1 }
 0x6a4   : > { %2264 = vmatprep.mubr.msk.f32.mxu0 %vm478_vm1, %v823_v26 }
 0x6a7   : > { %v824_v27 = vpop.trf.xlu1 }
 0x6a8   : > { %2265 = vmatmul.mubr.msk.f32.gmra.mrb[16].mxu0 %vm478_vm1, %v824_v27 }
 0x6ab   : > { %v825_v42 = vpop.trf.xlu1 }
 0x6ac   : > { %2267 = vmatprep.mubr.msk.f32.mxu0 %vm478_vm1, %v825_v42 }
 0x6af   : > { %v826_v28 = vpop.trf.xlu1 }
 0x6b0   : > { %2268 = vmatmul.mubr.msk.f32.gmra.mrb[18].mxu0 %vm478_vm1, %v826_v28 }
 0x6b1   : > { %2286 = vmatprep.mubr.msk.f32.mxu0 %vm2555_vm3, %v2556_v41 }
 0x6bc   : > { %v1529_v29 = vpop.trf.xlu0 }
 0x6bd   : > { %2324 = vmatprep.mubr.msk.f32.mxu1 %vm478_vm1, %v1529_v29 }
 0x6c0   : > { %v1530_v30 = vpop.trf.xlu0 }
 0x6c1   : > { %2325 = vmatmul.mubr.msk.f32.vlgmr.msra.gmra.mrb[20].mxu1 %vm478_vm1, %v1530_v30 }
 0x6c4   : > { %v1531_v31 = vpop.trf.xlu0 }
 0x6c5   : > { %2327 = vmatprep.mubr.msk.f32.mxu1 %vm478_vm1, %v1531_v31 }
 0x6c8   : > { %v1532_v32 = vpop.trf.xlu0 }
 0x6c9   : > { %2328 = vmatmul.mubr.msk.f32.gmra.mrb[22].mxu1 %vm478_vm1, %v1532_v32 }
 0x6cc   : > { %v1533_v33 = vpop.trf.xlu0 }
 0x6cd   : > { %2330 = vmatprep.mubr.msk.f32.mxu1 %vm478_vm1, %v1533_v33 }
 0x6d0   : > { %v1534_v34 = vpop.trf.xlu0 }
 0x6d1   : > { %2331 = vmatmul.mubr.msk.f32.gmra.mrb[24].mxu1 %vm478_vm1, %v1534_v34 }
 0x6d4   : > { %v1535_v35 = vpop.trf.xlu0 }
 0x6d5   : > { %2333 = vmatprep.mubr.msk.f32.mxu1 %vm478_vm1, %v1535_v35 }
 0x6d8   : > { %v1536_v36 = vpop.trf.xlu0 }
 0x6d9   : > { %2334 = vmatmul.mubr.msk.f32.gmra.mrb[26].mxu1 %vm478_vm1, %v1536_v36 }
 0x758   : > { %v1508_v38 = vpop.f32.mrb[18].mxu1 }
 0x759   : > { %1512 = vst.msk [vmem:[#allocation2 + $0x10] sm:$0xff] %vm608_vm2, %v1508_v38  ;;  %v2321_v39 = vpop.f32.mrb[19].mxu1 }
 0x76b   : > { %v2260_v40 = vpop.f32.mrb[12].mxu0 }
 0x76c   : > { %v925_v43 = vpop.f32.mrb[13].mxu0  ;;  %v967_v46 = vsel %vm608_vm2, %v2260_v40, -inf }
 0x76d   : > { %968 = vmax.xlane.f32.xlu1 %v967_v46  ;;  %v964_v47 = vsel %vm608_vm2, %v925_v43, -inf }
 0x76e   : > { %965 = vmax.xlane.f32.xlu0 %v964_v47 }
 0x773   : > { %v2263_v48 = vpop.f32.mrb[14].mxu0 }
 0x774   : > { %v935_v49 = vpop.f32.mrb[15].mxu0  ;;  %v973_v50 = vsel %vm608_vm2, %v2263_v48, -inf }
 0x775   : > { %974 = vmax.xlane.f32.xlu1 %v973_v50  ;;  %v970_v51 = vsel %vm608_vm2, %v935_v49, -inf }
 0x776   : > { %971 = vmax.xlane.f32.xlu0 %v970_v51 }
 0x77b   : > { %v2266_v52 = vpop.f32.mrb[16].mxu0 }
 0x77c   : > { %v945_v53 = vpop.f32.mrb[17].mxu0  ;;  %v979_v55 = vsel %vm608_vm2, %v2266_v52, -inf }
 0x77d   : > { %980 = vmax.xlane.f32.xlu1 %v979_v55  ;;  %v976_v56 = vsel %vm608_vm2, %v945_v53, -inf }
 0x77e   : > { %977 = vmax.xlane.f32.xlu0 %v976_v56 }
 0x783   : > { %v2845_v57 = vpop.f32.mrb[18].mxu0 }
 0x784   : > { %v2847_v58 = vpop.f32.mrb[19].mxu0  ;;  %v985_v59 = vsel %vm608_vm2, %v2845_v57, -inf }
 0x785   : > { %986 = vmax.xlane.f32.xlu1 %v985_v59  ;;  %v982_v60 = vsel %vm608_vm2, %v2847_v58, -inf }
 0x786   : > { %983 = vmax.xlane.f32.xlu0 %v982_v60 }
 0x794   : > { %v2853_v18 = vpop.f32.mrb[20].mxu1 }
 0x795   : > { %v2855_v24 = vpop.f32.mrb[21].mxu1  ;;  %v1677_v61 = vsel %vm608_vm2, %v2853_v18, -inf }
 0x796   : > { %1678 = vmax.xlane.f32.xlu1 %v1677_v61  ;;  %v1674_v62 = vsel %vm608_vm2, %v2855_v24, -inf }
 0x797   : > { %1675 = vmax.xlane.f32.xlu0 %v1674_v62 }
 0x79c   : > { %v2861_v63 = vpop.f32.mrb[22].mxu1 }
 0x79d   : > { %v2863_v0 = vpop.f32.mrb[23].mxu1  ;;  %v1683_v1 = vsel %vm608_vm2, %v2861_v63, -inf }
 0x79e   : > { %1684 = vmax.xlane.f32.xlu1 %v1683_v1  ;;  %v1680_v2 = vsel %vm608_vm2, %v2863_v0, -inf }
 0x79f   : > { %1681 = vmax.xlane.f32.xlu0 %v1680_v2 }
 0x7a4   : > { %v2869_v16 = vpop.f32.mrb[24].mxu1 }
 0x7a5   : > { %v2871_v3 = vpop.f32.mrb[25].mxu1  ;;  %v1689_v4 = vsel %vm608_vm2, %v2869_v16, -inf }
 0x7a6   : > { %1690 = vmax.xlane.f32.xlu1 %v1689_v4  ;;  %v1686_v5 = vsel %vm608_vm2, %v2871_v3, -inf }
 0x7a7   : > { %1687 = vmax.xlane.f32.xlu0 %v1686_v5 }
 0x7ac   : > { %v2877_v6 = vpop.f32.mrb[26].mxu1 }
 0x7ad   : > { %v2879_v7 = vpop.f32.mrb[27].mxu1  ;;  %v1695_v13 = vsel %vm608_vm2, %v2877_v6, -inf }
 0x7ae   : > { %1696 = vmax.xlane.f32.xlu1 %v1695_v13  ;;  %v1692_v8 = vsel %vm608_vm2, %v2879_v7, -inf }
 0x7af   : > { %1693 = vmax.xlane.f32.xlu0 %v1692_v8 }
 0x7fa   : > { %v969_v9 = vpop.xlane.xlu1 %968 }
 0x7fb   : > { %v989_v10 = vsub.f32 %v2260_v40, %v969_v9  ;;  %v966_v11 = vpop.xlane.xlu0 %965 }
 0x7fc   : > { %v988_v12 = vsub.f32 %v925_v43, %v966_v11 }
 0x7fe   : > { %v996_v14 = vpack.c.bf16 %v989_v10, %v988_v12 }
 0x800   : > { %v1001_v15 = vmul.bf16 1069105081, %v996_v14 }
 0x802   : > { %2497 = vpow.bf16 %v1001_v15  ;;  %v975_v17 = vpop.xlane.xlu1 %974 }
 0x803   : > { %v991_v20 = vsub.f32 %v2263_v48, %v975_v17  ;;  %v972_v21 = vpop.xlane.xlu0 %971 }
 0x804   : > { %v990_v22 = vsub.f32 %v935_v49, %v972_v21 }
 0x806   : > { %v997_v19 = vpack.c.bf16 %v991_v20, %v990_v22 }
 0x808   : > { %v1004_v25 = vmul.bf16 1069105081, %v997_v19 }
 0x80a   : > { %2499 = vpow.bf16 %v1004_v25  ;;  %v981_v23 = vpop.xlane.xlu1 %980 }
 0x80b   : > { %v993_v26 = vsub.f32 %v2266_v52, %v981_v23  ;;  %v978_v27 = vpop.xlane.xlu0 %977 }
 0x80c   : > { %v992_v42 = vsub.f32 %v945_v53, %v978_v27 }
 0x80d   : > { %v2885_v28 = vpop.eup %2497 }
 0x80e   : > { %v998_v29 = vpack.c.bf16 %v993_v26, %v992_v42  ;;  %v1013_v30 = vunpack.c.h.bf16 %v2885_v28  ;;  %v1012_v31 = vunpack.c.l.bf16 %v2885_v28 }
 0x810   : > { %v1007_v32 = vmul.bf16 1069105081, %v998_v29  ;;  %v1023_v33 = vsel %vm608_vm2, %v1013_v30, 0.0  ;;  %v1020_v34 = vsel %vm608_vm2, %v1012_v31, 0.0 }
 0x811   : > { %1024 = vadd.xlane.f32.xlu1 %v1023_v33  ;;  %1021 = vadd.xlane.f32.xlu0 %v1020_v34 }
 0x812   : > { %2501 = vpow.bf16 %v1007_v32  ;;  %v987_v35 = vpop.xlane.xlu1 %986 }
 0x813   : > { %v995_v36 = vsub.f32 %v2845_v57, %v987_v35  ;;  %v984_v38 = vpop.xlane.xlu0 %983 }
 0x814   : > { %v994_v39 = vsub.f32 %v2847_v58, %v984_v38 }
 0x815   : > { %v2897_v40 = vpop.eup %2499 }
 0x816   : > { %v999_v43 = vpack.c.bf16 %v995_v36, %v994_v39  ;;  %v1015_v46 = vunpack.c.h.bf16 %v2897_v40  ;;  %v1014_v47 = vunpack.c.l.bf16 %v2897_v40 }
 0x818   : > { %v1010_v48 = vmul.bf16 1069105081, %v999_v43  ;;  %v1029_v49 = vsel %vm608_vm2, %v1015_v46, 0.0  ;;  %v1026_v50 = vsel %vm608_vm2, %v1014_v47, 0.0 }
 0x819   : > { %1030 = vadd.xlane.f32.xlu1 %v1029_v49  ;;  %1027 = vadd.xlane.f32.xlu0 %v1026_v50 }
 0x81a   : > { %2503 = vpow.bf16 %v1010_v48 }
 0x81d   : > { %v2907_v51 = vpop.eup %2501 }
 0x81e   : > { %v1017_v52 = vunpack.c.h.bf16 %v2907_v51  ;;  %v1016_v53 = vunpack.c.l.bf16 %v2907_v51 }
 0x820   : > { %v1035_v55 = vsel %vm608_vm2, %v1017_v52, 0.0  ;;  %v1032_v56 = vsel %vm608_vm2, %v1016_v53, 0.0 }
 0x821   : > { %1036 = vadd.xlane.f32.xlu1 %v1035_v55  ;;  %1033 = vadd.xlane.f32.xlu0 %v1032_v56  ;;  %v253_v56 = vld [vmem:[%s3078_s2 + $0x48] sm:$0xff] }
 0x823   : > { %v1679_v57 = vpop.xlane.xlu1 %1678 }
 0x824   : > { %v1699_v58 = vsub.f32 %v2853_v18, %v1679_v57  ;;  %v1676_v59 = vpop.xlane.xlu0 %1675  ;;  %v1878_v57 = vld [vmem:[%s3080_s4] sm:$0xff] }
 0x825   : > { %v2918_v60 = vpop.eup %2503  ;;  %v1698_v61 = vsub.f32 %v2855_v24, %v1676_v59  ;;  %v1879_v59 = vld [vmem:[%s3080_s4 + $0x8] sm:$0xff] }
 0x826   : > { %v1019_v62 = vunpack.c.h.bf16 %v2918_v60  ;;  %v1018_v1 = vunpack.c.l.bf16 %v2918_v60 }
 0x827   : > { %v1706_v2 = vpack.c.bf16 %v1699_v58, %v1698_v61  ;;  %v255_v58 = vld [vmem:[%s3078_s2 + $0x58] sm:$0xff]  ;;  %v1880_v61 = vld [vmem:[%s3080_s4 + $0x10] sm:$0xff] }
 0x828   : > { %v1041_v4 = vsel %vm608_vm2, %v1019_v62, 0.0  ;;  %v1038_v5 = vsel %vm608_vm2, %v1018_v1, 0.0 }
 0x829   : > { %v1711_v13 = vmul.bf16 1069105081, %v1706_v2  ;;  %1042 = vadd.xlane.f32.xlu1 %v1041_v4  ;;  %1039 = vadd.xlane.f32.xlu0 %v1038_v5  ;;  %v1881_v2 = vld [vmem:[%s3080_s4 + $0x18] sm:$0xff] }
 0x82b   : > { %2505 = vpow.bf16 %v1711_v13  ;;  %v1685_v18 = vpop.xlane.xlu1 %1684 }
 0x82c   : > { %v1701_v24 = vsub.f32 %v2861_v63, %v1685_v18  ;;  %v1682_v8 = vpop.xlane.xlu0 %1681 }
 0x82d   : > { %v1700_v9 = vsub.f32 %v2863_v0, %v1682_v8 }
 0x82f   : > { %v1707_v10 = vpack.c.bf16 %v1701_v24, %v1700_v9 }
 0x831   : > { %v1714_v11 = vmul.bf16 1069105081, %v1707_v10 }
 0x833   : > { %2507 = vpow.bf16 %v1714_v11  ;;  %v1691_v12 = vpop.xlane.xlu1 %1690 }
 0x834   : > { %v1703_v14 = vsub.f32 %v2869_v16, %v1691_v12  ;;  %v1688_v15 = vpop.xlane.xlu0 %1687 }
 0x835   : > { %v1702_v17 = vsub.f32 %v2871_v3, %v1688_v15 }
 0x836   : > { %v2933_v20 = vpop.eup %2505 }
 0x837   : > { %v1708_v21 = vpack.c.bf16 %v1703_v14, %v1702_v17  ;;  %v1723_v22 = vunpack.c.h.bf16 %v2933_v20  ;;  %v1722_v19 = vunpack.c.l.bf16 %v2933_v20 }
 0x839   : > { %v1717_v63 = vmul.bf16 1069105081, %v1708_v21  ;;  %v1733_v0 = vsel %vm608_vm2, %v1723_v22, 0.0  ;;  %v1730_v25 = vsel %vm608_vm2, %v1722_v19, 0.0 }
 0x83a   : > { %1734 = vadd.xlane.f32.xlu1 %v1733_v0  ;;  %1731 = vadd.xlane.f32.xlu0 %v1730_v25 }
 0x83b   : > { %2509 = vpow.bf16 %v1717_v63  ;;  %v1697_v16 = vpop.xlane.xlu1 %1696 }
 0x83c   : > { %v1705_v3 = vsub.f32 %v2877_v6, %v1697_v16  ;;  %v1694_v23 = vpop.xlane.xlu0 %1693 }
 0x83d   : > { %v1704_v26 = vsub.f32 %v2879_v7, %v1694_v23 }
 0x83e   : > { %v2945_v27 = vpop.eup %2507 }
 0x83f   : > { %v1709_v42 = vpack.c.bf16 %v1705_v3, %v1704_v26  ;;  %v1725_v29 = vunpack.c.h.bf16 %v2945_v27  ;;  %v1724_v32 = vunpack.c.l.bf16 %v2945_v27 }
 0x841   : > { %v1720_v33 = vmul.bf16 1069105081, %v1709_v42  ;;  %v1739_v34 = vsel %vm608_vm2, %v1725_v29, 0.0  ;;  %v1736_v35 = vsel %vm608_vm2, %v1724_v32, 0.0 }
 0x842   : > { %1740 = vadd.xlane.f32.xlu1 %v1739_v34  ;;  %1737 = vadd.xlane.f32.xlu0 %v1736_v35 }
 0x843   : > { %2511 = vpow.bf16 %v1720_v33 }
 0x846   : > { %v2955_v6 = vpop.eup %2509 }
 0x847   : > { %v1727_v7 = vunpack.c.h.bf16 %v2955_v6  ;;  %v1726_v36 = vunpack.c.l.bf16 %v2955_v6 }
 0x849   : > { %v1745_v38 = vsel %vm608_vm2, %v1727_v7, 0.0  ;;  %v1742_v39 = vsel %vm608_vm2, %v1726_v36, 0.0 }
 0x84a   : > { %1746 = vadd.xlane.f32.xlu1 %v1745_v38  ;;  %1743 = vadd.xlane.f32.xlu0 %v1742_v39 }
 0x84e   : > { %v2965_v43 = vpop.eup %2511 }
 0x84f   : > { %v1728_v48 = vunpack.c.l.bf16 %v2965_v43  ;;  %v1729_v50 = vunpack.c.h.bf16 %v2965_v43 }
 0x851   : > { %v1748_v49 = vsel %vm608_vm2, %v1728_v48, 0.0  ;;  %v1751_v55 = vsel %vm608_vm2, %v1729_v50, 0.0 }
 0x852   : > { %1749 = vadd.xlane.f32.xlu1 %v1748_v49 }
 0x856   : > { %1752 = vadd.xlane.f32.xlu1 %v1751_v55 }
 0x860   : > { %303 = vperm.xlu0 %2439, %v253_v56  }
 0x864   : > { %1884 = vperm.xlu0 %2439, %v1878_v57  }
 0x867   : > { %313 = vperm.xlu1 %2440, %v255_v58  }
 0x868   : > { %1889 = vperm.xlu0 %2439, %v1879_v59  }
 0x86b   : > { %1894 = vperm.xlu1 %2440, %v1880_v61  }
 0x86c   : > { %1899 = vperm.xlu0 %2439, %v1881_v2  }
 0x89e   : > { %v1022_v4 = vpop.xlane.xlu0 %1021  ;;  %v1025_v5 = vpop.xlane.xlu1 %1024 }
 0x89f   : > { %2513 = vrcp.f32 %v1022_v4 }
 0x8a0   : > { %2515 = vrcp.f32 %v1025_v5 }
 0x8a6   : > { %v1028_v13 = vpop.xlane.xlu0 %1027  ;;  %v1031_v18 = vpop.xlane.xlu1 %1030 }
 0x8a7   : > { %2517 = vrcp.f32 %v1028_v13 }
 0x8a8   : > { %2519 = vrcp.f32 %v1031_v18 }
 0x8a9   : > { %v2514_v24 = vpop.eup %2513 }
 0x8aa   : > { %v2516_v8 = vpop.eup %2515  ;;  %v1052_v9 = vmul.f32 %v2514_v24, %v1012_v31  ;;  %v1874_v24 = vld [vmem:[#allocation2 + $0x10] sm:$0xff] }
 0x8ab   : > { %v1053_v10 = vmul.f32 %v2516_v8, %v1013_v30 }
 0x8ad   : > { %v2380_v11 = vpack.c.bf16 %v1053_v10, %v1052_v9  ;;  %v2448_v10 = vld [vmem:[%s3079_s3 + $0x8] sm:$0xff]  }
 0x8ae   : > { %v1034_v12 = vpop.xlane.xlu0 %1033  ;;  %v1037_v14 = vpop.xlane.xlu1 %1036 }
 0x8af   : > { %2521 = vrcp.f32 %v1034_v12  ;;  %2382 = vmatpush3.bf16.xpose.msk.msra.mxu0 %vm2715_vm4, %v2380_v11 }
 0x8b0   : > { %2523 = vrcp.f32 %v1037_v14  ;;  %2383 = vmatprep.subr.bf16.mxu0 %v2554_v37 }
 0x8b1   : > { %v2518_v15 = vpop.eup %2517 }
 0x8b2   : > { %v2520_v17 = vpop.eup %2519  ;;  %v1054_v21 = vmul.f32 %v2518_v15, %v1014_v47 }
 0x8b3   : > { %v1055_v31 = vmul.f32 %v2520_v17, %v1015_v46 }
 0x8b5   : > { %v2384_v28 = vpack.c.bf16 %v1055_v31, %v1054_v21 }
 0x8b6   : > { %v1040_v30 = vpop.xlane.xlu0 %1039  ;;  %v1043_v63 = vpop.xlane.xlu1 %1042 }
 0x8b7   : > { %2525 = vrcp.f32 %v1040_v30  ;;  %2386 = vmatpush3.bf16.xpose.msk.msra.mxu0 %vm2715_vm4, %v2384_v28 }
 0x8b8   : > { %2527 = vrcp.f32 %v1043_v63  ;;  %2387 = vmatprep.subr.bf16.mxu0 %v2554_v37 }
 0x8b9   : > { %v2522_v0 = vpop.eup %2521 }
 0x8ba   : > { %v2524_v25 = vpop.eup %2523  ;;  %v1056_v16 = vmul.f32 %v2522_v0, %v1016_v53 }
 0x8bb   : > { %v1057_v47 = vmul.f32 %v2524_v25, %v1017_v52 }
 0x8bd   : > { %v2388_v40 = vpack.c.bf16 %v1057_v47, %v1056_v16 }
 0x8bf   : > { %2390 = vmatpush3.bf16.xpose.msk.msra.mxu0 %vm2715_vm4, %v2388_v40 }
 0x8c0   : > { %2391 = vmatprep.subr.bf16.mxu0 %v2554_v37 }
 0x8c1   : > { %v2526_v46 = vpop.eup %2525 }
 0x8c2   : > { %v2528_v3 = vpop.eup %2527  ;;  %v1058_v23 = vmul.f32 %v2526_v46, %v1018_v1 }
 0x8c3   : > { %v1059_v26 = vmul.f32 %v2528_v3, %v1019_v62 }
 0x8c5   : > { %v2392_v42 = vpack.c.bf16 %v1059_v26, %v1058_v23 }
 0x8c7   : > { %2394 = vmatpush3.bf16.xpose.msk.msra.mxu0 %vm2715_vm4, %v2392_v42  ;;  %v1732_v51 = vpop.xlane.xlu0 %1731  ;;  %v1735_v52 = vpop.xlane.xlu1 %1734 }
 0x8c8   : > { %2411 = vmatprep.subr.bf16.mxu0 %v2554_v37  ;;  %2529 = vrcp.f32 %v1732_v51 }
 0x8c9   : > { %2531 = vrcp.f32 %v1735_v52 }
 0x8cf   : > { %v1738_v53 = vpop.xlane.xlu0 %1737  ;;  %v1741_v33 = vpop.xlane.xlu1 %1740 }
 0x8d0   : > { %2533 = vrcp.f32 %v1738_v53 }
 0x8d1   : > { %2535 = vrcp.f32 %v1741_v33 }
 0x8d2   : > { %v2530_v34 = vpop.eup %2529 }
 0x8d3   : > { %v2532_v35 = vpop.eup %2531  ;;  %v1762_v60 = vmul.f32 %v2530_v34, %v1722_v19 }
 0x8d4   : > { %v1763_v62 = vmul.f32 %v2532_v35, %v1723_v22 }
 0x8d6   : > { %v2412_v57 = vpack.c.bf16 %v1763_v62, %v1762_v60 }
 0x8d7   : > { %v1744_v1 = vpop.xlane.xlu0 %1743  ;;  %v1747_v38 = vpop.xlane.xlu1 %1746 }
 0x8d8   : > { %2537 = vrcp.f32 %v1744_v1 }
 0x8d9   : > { %2539 = vrcp.f32 %v1747_v38 }
 0x8da   : > { %v2534_v56 = vpop.eup %2533 }
 0x8db   : > { %v2536_v58 = vpop.eup %2535  ;;  %v1764_v20 = vmul.f32 %v2534_v56, %v1724_v32 }
 0x8dc   : > { %v1765_v22 = vmul.f32 %v2536_v58, %v1725_v29 }
 0x8de   : > { %v2416_v59 = vpack.c.bf16 %v1765_v22, %v1764_v20 }
 0x8df   : > { %v304_v39 = vpop.permute.xlu0 %303  ;;  %v1750_v49 = vpop.xlane.xlu1 %1749 }
 0x8e0   : > { %v435_v55 = vadd.f32 %v2709_v45, %v304_v39 }
 0x8e2   : > { %2287 = vmatmul.mubr.msk.f32.vlgmr.msra.gmra.mrb[20].mxu0 %vm608_vm2, %v435_v55  ;;  %v2538_v19 = vpop.eup %2537 }
 0x8e3   : > { %2414 = vmatpush3.bf16.xpose.msk.msra.mxu0 %vm2715_vm4, %v2412_v57  ;;  %2352 = vmatprep.mubr.msk.f32.mxu0 %vm2555_vm3, %v2556_v41  ;;  %v1753_v45 = vpop.xlane.xlu1 %1752  ;;  %v2540_v61 = vpop.eup %2539  ;;  %v1766_v41 = vmul.f32 %v2538_v19, %v1726_v36  ;;  %v2447_v36 = vld [vmem:[%s3079_s3] sm:$0xff]  }
 0x8e4   : > { %2415 = vmatprep.subr.bf16.mxu0 %v2554_v37  ;;  %2541 = vrcp.f32 %v1753_v45  ;;  %v1767_v32 = vmul.f32 %v2540_v61, %v1727_v7  ;;  %2359 = vmatprep.mubr.msk.bf16.mxu1 %vm346_vm0, %v2447_v36  ;;  %v1885_v11 = vpop.permute.xlu0 %1884 }
 0x8e5   : > { %2543 = vrcp.f32 %v1750_v49 }
 0x8e6   : > { %v2420_v2 = vpack.c.bf16 %v1767_v32, %v1766_v41 }
 0x8e7   : > { %v314_v6 = vpop.permute.xlu1 %313 }
 0x8e8   : > { %v443_v7 = vadd.f32 %v2707_v44, %v314_v6  ;;  %v1890_v12 = vpop.permute.xlu0 %1889 }
 0x8eb   : > { %2418 = vmatpush3.bf16.xpose.msk.msra.mxu0 %vm2715_vm4, %v2416_v59  ;;  %v1895_v14 = vpop.permute.xlu1 %1894 }
 0x8ec   : > { %2419 = vmatprep.subr.bf16.mxu0 %v2554_v37  ;;  %v1900_v31 = vpop.permute.xlu0 %1899 }
 0x8ee   : > { %v2542_v27 = vpop.eup %2541 }
 0x8ef   : > { %v2544_v29 = vpop.eup %2543  ;;  %v1769_v4 = vmul.f32 %v2542_v27, %v1729_v50 }
 0x8f0   : > { %v1768_v5 = vmul.f32 %v2544_v29, %v1728_v48  ;;  %v1872_v48 = vld [vmem:[#allocation2] sm:$0xff] }
 0x8f2   : > { %v2424_v13 = vpack.c.bf16 %v1769_v4, %v1768_v5 }
 0x8f3   : > { %2422 = vmatpush3.bf16.xpose.msk.msra.mxu0 %vm2715_vm4, %v2420_v2 }
 0x8f4   : > { %2423 = vmatprep.subr.bf16.mxu0 %v2554_v37 }
 0x8fb   : > { %2426 = vmatpush3.bf16.xpose.msk.msra.mxu0 %vm2715_vm4, %v2424_v13 }
 0x902   : > { %2353 = vmatmul.mubr.msk.f32.vlgmr.msra.gmra.mrb[22].mxu0 %vm608_vm2, %v443_v7 }
 0x9b5   : > { %v1153_v37 = vpop.f32.mrb[20].mxu0 }
 0x9b6   : > { %1157 = vst.msk [vmem:[#allocation2 + $0x8] sm:$0xff] %vm608_vm2, %v1153_v37  ;;  %v2288_v43 = vpop.f32.mrb[21].mxu0 }
 0x9bd   : > { %v1873_v50 = vld [vmem:[#allocation2 + $0x8] sm:$0xff] }
 0x9be   : > { %v1876_v54 = vpack.c.bf16 %v1873_v50, %v1872_v48 }
 0x9c0   : > { %2355 = vmatprep.subr.bf16.mxu1 %v1876_v54 }
 0x9c1   : > { %2356 = vmatpush3.bf16.msra.mxu1 %v1876_v54 }
 0x9d5   : > { %v1863_v18 = vpop.f32.mrb[22].mxu0 }
 0x9d6   : > { %1867 = vst.msk [vmem:[#allocation2 + $0x18] sm:$0xff] %vm608_vm2, %v1863_v18  ;;  %v2354_v44 = vpop.f32.mrb[23].mxu0 }
 0x9dd   : > { %v1875_v8 = vld [vmem:[#allocation2 + $0x18] sm:$0xff] }
 0x9de   : > { %v1877_v9 = vpack.c.bf16 %v1875_v8, %v1874_v24 }
 0x9e0   : > { %2357 = vmatprep.subr.bf16.mxu1 %v1877_v9 }
 0x9e1   : > { %2358 = vmatpush3.bf16.msra.mxu1 %v1877_v9 }
 0x9e4   : > { %2360 = vmatmul.mubr.msk.bf16.vlgmr.msra.gmra.mrb[28].mxu1 %vm346_vm0, %v2448_v10 }
 0xab7   : > { %v2361_v15 = vpop.f32.mrb[28].mxu1 }
 0xab8   : > { %v1961_v17 = vadd.f32 %v2361_v15, %v1895_v14  ;;  %v1952_v21 = vpop.f32.mrb[29].mxu1 }
 0xab9   : > { %v1953_v28 = vadd.f32 %v1952_v21, %v1885_v11  ;;  %v2362_v30 = vpop.f32.mrb[30].mxu1 }
 0xaba   : > { %1969 = vst.msk [vmem:[%s224_s30 + $0x10] sm:$0xff] %vm608_vm2, %v1961_v17  ;;  %v1964_v63 = vadd.f32 %v2362_v30, %v1900_v31  ;;  %v1955_v0 = vpop.f32.mrb[31].mxu1 }
 0xabb   : > { %1967 = vst.msk [vmem:[%s224_s30] sm:$0xff] %vm608_vm2, %v1953_v28  ;;  %v1956_v25 = vadd.f32 %v1955_v0, %v1890_v12 }
 0xabc   : > { %1970 = vst.msk [vmem:[%s224_s30 + $0x18] sm:$0xff] %vm608_vm2, %v1964_v63 }
 0xabd   : > { %1968 = vst.msk [vmem:[%s224_s30 + $0x8] sm:$0xff] %vm608_vm2, %v1956_v25 }
 0xabe PF: > { %s15_s18 = sadd.s32 1, %s2551_s18  }
 0xabf   : > { %p12_p4 = scmp.ge.s32.totalorder %s15_s18, 4  }
 0xac1   :  { %14 = sbr.rel (!%p12_p4) target bundleno = 1 (0x1), region = 70 }

</bundles_post_ra>
